<compile_context>
chip_gen: v7x
topology: tpu7x:2x2x1
jax: 0.10.0
libtpu: 0.0.40
codegen_flags: <defaults>
</compile_context>

<pallas_src>
import jax
import jax.numpy as jnp
from jax import lax
from jax.experimental import pallas as pl
from jax.experimental.pallas import tpu as pltpu


def _attention_kernel(x_ref, wq_ref, wk_ref, wv_ref, wp_ref, bp_ref, o_ref, acc_ref):
    """One grid step = one (batch, head) pair."""
    h = pl.program_id(1)

    x = x_ref[0]                                                    # (N, C) bf16

    # Per-head projections: bf16 MXU operands, f32 accumulation.
    # Softmax scale is already folded into wq in the wrapper.
    q = jnp.dot(x, wq_ref[0], preferred_element_type=jnp.float32)   # (N, D)
    k = jnp.dot(x, wk_ref[0], preferred_element_type=jnp.float32)   # (N, D)
    v = jnp.dot(x, wv_ref[0], preferred_element_type=jnp.float32)   # (N, D)

    # Scores: contract last dims of Q and K directly (no materialized K^T).
    s = lax.dot_general(q.astype(jnp.bfloat16), k.astype(jnp.bfloat16),
                        (((1,), (1,)), ((), ())),
                        preferred_element_type=jnp.float32)         # (N, N) f32

    # Softmax in f32 (max-subtracted); divide via EUP approx reciprocal.
    m = jnp.max(s, axis=-1, keepdims=True)
    p = jnp.exp(s - m)
    l = jnp.sum(p, axis=-1, keepdims=True)
    p = p * pl.reciprocal(l, approx=True)
    # TODO(synk): rel_pos_bias addition not wired in (forward is called with None);
    # attn_drop / proj_drop with p=0.0 are identities.

    ctx = jnp.dot(p.astype(jnp.bfloat16), v.astype(jnp.bfloat16),
                  preferred_element_type=jnp.float32)               # (N, D) f32

    # This head's slice of the output projection: (N, D) @ (D, C).
    part = jnp.dot(ctx.astype(jnp.bfloat16), wp_ref[0],
                   preferred_element_type=jnp.float32)              # (N, C) f32

    @pl.when(h == 0)
    def _():
        acc_ref[...] = jnp.zeros_like(acc_ref)

    acc_ref[...] += part

    @pl.when(h == pl.num_programs(1) - 1)
    def _():
        o_ref[0] = (acc_ref[...] + bp_ref[...]).astype(o_ref.dtype)


def attention_forward(x, wqkv, wproj, bproj, *, num_heads):
    """x: (B, N, C); wqkv: (3C, C) torch Linear layout; wproj: (C, C); bproj: (C,)."""
    B, N, C = x.shape
    D = C // num_heads
    scale = D ** (-0.5)

    # Re-layout torch weights per head so the kernel never slices lanes:
    #   Wq/Wk/Wv: (H, C, D)  -> q_h = x @ Wq[h]   (scale folded into Wq)
    #   Wp:       (H, D, C)  -> y   = sum_h ctx_h @ Wp[h]  (accumulated over head axis)
    wq = wqkv[0 * C:1 * C].reshape(num_heads, D, C).transpose(0, 2, 1) * scale
    wk = wqkv[1 * C:2 * C].reshape(num_heads, D, C).transpose(0, 2, 1)
    wv = wqkv[2 * C:3 * C].reshape(num_heads, D, C).transpose(0, 2, 1)
    wp = wproj.T.reshape(num_heads, D, C)

    # bf16 MXU operands (f32 accumulation inside the kernel); bias stays f32.
    x16 = x.astype(jnp.bfloat16)
    wq16 = wq.astype(jnp.bfloat16)
    wk16 = wk.astype(jnp.bfloat16)
    wv16 = wv.astype(jnp.bfloat16)
    wp16 = wp.astype(jnp.bfloat16)
    bproj_2d = bproj.reshape(1, C).astype(jnp.float32)

    return pl.pallas_call(
        _attention_kernel,
        out_shape=jax.ShapeDtypeStruct((B, N, C), x.dtype),
        grid_spec=pltpu.PrefetchScalarGridSpec(
            num_scalar_prefetch=0,
            grid=(B, num_heads),                    # batch: parallel, head: reduction
            in_specs=[
                pl.BlockSpec((1, N, C), lambda b, h: (b, 0, 0)),   # x (full seq: K/V need it)
                pl.BlockSpec((1, C, D), lambda b, h: (h, 0, 0)),   # Wq (scaled)
                pl.BlockSpec((1, C, D), lambda b, h: (h, 0, 0)),   # Wk
                pl.BlockSpec((1, C, D), lambda b, h: (h, 0, 0)),   # Wv
                pl.BlockSpec((1, D, C), lambda b, h: (h, 0, 0)),   # Wproj slice
                pl.BlockSpec((1, C), lambda b, h: (0, 0)),         # bias
            ],
            out_specs=pl.BlockSpec((1, N, C), lambda b, h: (b, 0, 0)),
            scratch_shapes=[pltpu.VMEM((N, C), jnp.float32)],      # head accumulator
        ),
        compiler_params=pltpu.CompilerParams(
            dimension_semantics=("parallel", "arbitrary"),
            # TODO(synk): at production shapes (ViT-L C=1024, N>=1024) audit VMEM and
            # switch to flash-style query/KV tiling for v7x's 64 MiB VMEM.
            vmem_limit_bytes=32 * 1024 * 1024,
        ),
    )(x16, wq16, wk16, wv16, wp16, bproj_2d)


def attention_reference(x, wqkv, wproj, bproj, *, num_heads):
    """Pure-JAX f32 reference mirroring the PyTorch forward (rel_pos_bias=None, dropout=0)."""
    B, N, C = x.shape
    D = C // num_heads
    qkv = jnp.einsum("bnc,oc->bno", x, wqkv)                  # (B, N, 3C)
    qkv = qkv.reshape(B, N, 3, num_heads, D).transpose(2, 0, 3, 1, 4)
    q, k, v = qkv[0], qkv[1], qkv[2]                           # (B, H, N, D)
    attn = jnp.einsum("bhnd,bhmd->bhnm", q, k) * (D ** -0.5)
    attn = jax.nn.softmax(attn, axis=-1)
    out = jnp.einsum("bhnm,bhmd->bhnd", attn, v)               # (B, H, N, D)
    out = out.transpose(0, 2, 1, 3).reshape(B, N, C)
    return jnp.einsum("bnc,oc->bno", out, wproj) + bproj


if __name__ == "__main__":
    B, N, C, H = 2, 8, 32, 4          # small ViT-like shapes; head_dim = 8

    key = jax.random.PRNGKey(0)
    kx, kw1, kw2, kb = jax.random.split(key, 4)
    x = jax.random.normal(kx, (B, N, C), dtype=jnp.float32)
    wqkv = jax.random.normal(kw1, (3 * C, C), dtype=jnp.float32) * 0.05   # torch Linear layout
    wproj = jax.random.normal(kw2, (C, C), dtype=jnp.float32) * 0.05
    bproj = jax.random.normal(kb, (C,), dtype=jnp.float32) * 0.05

    out = attention_forward(x, wqkv, wproj, bproj, num_heads=H)
    out = jax.block_until_ready(out)

    ref = attention_reference(x, wqkv, wproj, bproj, num_heads=H)
    assert out.shape == (B, N, C)
    # bf16 MXU operands => looser tolerance than the pure-f32 reference.
    assert jnp.allclose(out, ref, atol=2e-2, rtol=2e-2), "mismatch vs pure-JAX reference"
    print("KERNEL_OK")
</pallas_src>

<mosaic_0001>
module attributes {stable_mosaic.version = 11 : i64} {
  func.func @_attention_kernel(%arg0: i32, %arg1: i32, %arg2: memref<1x8x32xbf16, #tpu.memory_space<vmem>>, %arg3: memref<1x32x8xbf16, #tpu.memory_space<vmem>>, %arg4: memref<1x32x8xbf16, #tpu.memory_space<vmem>>, %arg5: memref<1x32x8xbf16, #tpu.memory_space<vmem>>, %arg6: memref<1x8x32xbf16, #tpu.memory_space<vmem>>, %arg7: memref<1x32xf32, #tpu.memory_space<vmem>>, %arg8: memref<1x8x32xf32, #tpu.memory_space<vmem>>, %arg9: memref<8x32xf32, #tpu.memory_space<vmem>>) attributes {dimension_semantics = [#tpu.dimension_semantics<parallel>, #tpu.dimension_semantics<arbitrary>], iteration_bounds = array<i64: 2, 4>, scalar_prefetch = 0 : i64, scratch_operands = 1 : i64, tpu.core_type = #tpu.core_type<tc>, window_params = [{transform_indices = @transform_0, window_bounds = array<i64: 1, 8, 32>}, {transform_indices = @transform_1, window_bounds = array<i64: 1, 32, 8>}, {transform_indices = @transform_2, window_bounds = array<i64: 1, 32, 8>}, {transform_indices = @transform_3, window_bounds = array<i64: 1, 32, 8>}, {transform_indices = @transform_4, window_bounds = array<i64: 1, 8, 32>}, {pipeline_mode = #tpu.pipeline_mode<synchronous>, transform_indices = @transform_5, window_bounds = array<i64: 1, 32>}, {transform_indices = @transform_6, window_bounds = array<i64: 1, 8, 32>}]} {
    %c0 = arith.constant 0 : index
    %c0_0 = arith.constant 0 : index
    %c0_1 = arith.constant 0 : index
    %0 = vector.load %arg2[%c0, %c0_0, %c0_1] : memref<1x8x32xbf16, #tpu.memory_space<vmem>>, vector<1x8x32xbf16>
    %1 = vector.shape_cast %0 : vector<1x8x32xbf16> to vector<8x32xbf16>
    %c0_2 = arith.constant 0 : index
    %c0_3 = arith.constant 0 : index
    %c0_4 = arith.constant 0 : index
    %2 = vector.load %arg3[%c0_2, %c0_3, %c0_4] : memref<1x32x8xbf16, #tpu.memory_space<vmem>>, vector<1x32x8xbf16>
    %3 = vector.shape_cast %2 : vector<1x32x8xbf16> to vector<32x8xbf16>
    %cst = arith.constant dense<0.000000e+00> : vector<8x8xf32>
    %4 = tpu.matmul %1, %3, %cst {dimension_numbers = #tpu.dot_dimension_numbers<[1], [0], [0], [1], [0, 0, 1, 1], [], []>} : vector<8x32xbf16>, vector<32x8xbf16>, vector<8x8xf32> -> vector<8x8xf32>
    %c0_5 = arith.constant 0 : index
    %c0_6 = arith.constant 0 : index
    %c0_7 = arith.constant 0 : index
    %5 = vector.load %arg4[%c0_5, %c0_6, %c0_7] : memref<1x32x8xbf16, #tpu.memory_space<vmem>>, vector<1x32x8xbf16>
    %6 = vector.shape_cast %5 : vector<1x32x8xbf16> to vector<32x8xbf16>
    %cst_8 = arith.constant dense<0.000000e+00> : vector<8x8xf32>
    %7 = tpu.matmul %1, %6, %cst_8 {dimension_numbers = #tpu.dot_dimension_numbers<[1], [0], [0], [1], [0, 0, 1, 1], [], []>} : vector<8x32xbf16>, vector<32x8xbf16>, vector<8x8xf32> -> vector<8x8xf32>
    %c0_9 = arith.constant 0 : index
    %c0_10 = arith.constant 0 : index
    %c0_11 = arith.constant 0 : index
    %8 = vector.load %arg5[%c0_9, %c0_10, %c0_11] : memref<1x32x8xbf16, #tpu.memory_space<vmem>>, vector<1x32x8xbf16>
    %9 = vector.shape_cast %8 : vector<1x32x8xbf16> to vector<32x8xbf16>
    %cst_12 = arith.constant dense<0.000000e+00> : vector<8x8xf32>
    %10 = tpu.matmul %1, %9, %cst_12 {dimension_numbers = #tpu.dot_dimension_numbers<[1], [0], [0], [1], [0, 0, 1, 1], [], []>} : vector<8x32xbf16>, vector<32x8xbf16>, vector<8x8xf32> -> vector<8x8xf32>
    %11 = arith.truncf %4 : vector<8x8xf32> to vector<8x8xbf16>
    %12 = arith.truncf %7 : vector<8x8xf32> to vector<8x8xbf16>
    %cst_13 = arith.constant dense<0.000000e+00> : vector<8x8xf32>
    %13 = tpu.matmul %11, %12, %cst_13 {dimension_numbers = #tpu.dot_dimension_numbers<[1], [1], [0], [0], [0, 0, 1, 0], [], []>} : vector<8x8xbf16>, vector<8x8xbf16>, vector<8x8xf32> -> vector<8x8xf32>
    %cst_14 = arith.constant dense<0xFF800000> : vector<8xf32>
    %14 = vector.multi_reduction <maximumf>, %13, %cst_14 [1] : vector<8x8xf32> to vector<8xf32>
    %15 = vector.shape_cast %14 : vector<8xf32> to vector<8x1xf32>
    %16 = vector.broadcast %15 : vector<8x1xf32> to vector<8x8xf32>
    %17 = arith.subf %13, %16 : vector<8x8xf32>
    %18 = math.exp %17 : vector<8x8xf32>
    %cst_15 = arith.constant dense<0.000000e+00> : vector<8xf32>
    %19 = vector.multi_reduction <add>, %18, %cst_15 [1] : vector<8x8xf32> to vector<8xf32>
    %20 = vector.shape_cast %19 : vector<8xf32> to vector<8x1xf32>
    %21 = tpu.reciprocal %20 {approx = true} : vector<8x1xf32> -> vector<8x1xf32>
    %22 = vector.broadcast %21 : vector<8x1xf32> to vector<8x8xf32>
    %23 = arith.mulf %18, %22 : vector<8x8xf32>
    %24 = arith.truncf %23 : vector<8x8xf32> to vector<8x8xbf16>
    %25 = arith.truncf %10 : vector<8x8xf32> to vector<8x8xbf16>
    %cst_16 = arith.constant dense<0.000000e+00> : vector<8x8xf32>
    %26 = tpu.matmul %24, %25, %cst_16 {dimension_numbers = #tpu.dot_dimension_numbers<[1], [0], [0], [1], [0, 0, 1, 1], [], []>} : vector<8x8xbf16>, vector<8x8xbf16>, vector<8x8xf32> -> vector<8x8xf32>
    %27 = arith.truncf %26 : vector<8x8xf32> to vector<8x8xbf16>
    %c0_17 = arith.constant 0 : index
    %c0_18 = arith.constant 0 : index
    %c0_19 = arith.constant 0 : index
    %28 = vector.load %arg6[%c0_17, %c0_18, %c0_19] : memref<1x8x32xbf16, #tpu.memory_space<vmem>>, vector<1x8x32xbf16>
    %29 = vector.shape_cast %28 : vector<1x8x32xbf16> to vector<8x32xbf16>
    %cst_20 = arith.constant dense<0.000000e+00> : vector<8x32xf32>
    %30 = tpu.matmul %27, %29, %cst_20 {dimension_numbers = #tpu.dot_dimension_numbers<[1], [0], [0], [1], [0, 0, 1, 1], [], []>} : vector<8x8xbf16>, vector<8x32xbf16>, vector<8x32xf32> -> vector<8x32xf32>
    %c0_i32 = arith.constant 0 : i32
    %31 = arith.cmpi eq, %arg1, %c0_i32 : i32
    %32 = arith.extui %31 : i1 to i32
    %c0_i32_21 = arith.constant 0 : i32
    %33 = arith.cmpi ne, %32, %c0_i32_21 : i32
    scf.if %33 {
      %cst_27 = arith.constant 0.000000e+00 : f32
      %40 = vector.broadcast %cst_27 : f32 to vector<8x32xf32>
      %c0_28 = arith.constant 0 : index
      %c0_29 = arith.constant 0 : index
      %41 = vector.load %arg9[%c0_28, %c0_29] : memref<8x32xf32, #tpu.memory_space<vmem>>, vector<8x32xf32>
      tpu.vector_store %arg9[%c0_28, %c0_29], %40 {strides = array<i32>} : memref<8x32xf32, #tpu.memory_space<vmem>>, vector<8x32xf32>,
    } else {
    }
    %c0_22 = arith.constant 0 : index
    %c0_23 = arith.constant 0 : index
    %34 = vector.load %arg9[%c0_22, %c0_23] : memref<8x32xf32, #tpu.memory_space<vmem>>, vector<8x32xf32>
    %35 = arith.addf %34, %30 : vector<8x32xf32>
    %c0_24 = arith.constant 0 : index
    %c0_25 = arith.constant 0 : index
    %36 = vector.load %arg9[%c0_24, %c0_25] : memref<8x32xf32, #tpu.memory_space<vmem>>, vector<8x32xf32>
    tpu.vector_store %arg9[%c0_24, %c0_25], %35 {strides = array<i32>} : memref<8x32xf32, #tpu.memory_space<vmem>>, vector<8x32xf32>,
    %c3_i32 = arith.constant 3 : i32
    %37 = arith.cmpi eq, %arg1, %c3_i32 : i32
    %38 = arith.extui %37 : i1 to i32
    %c0_i32_26 = arith.constant 0 : i32
    %39 = arith.cmpi ne, %38, %c0_i32_26 : i32
    scf.if %39 {
      %c0_27 = arith.constant 0 : index
      %c0_28 = arith.constant 0 : index
      %40 = vector.load %arg9[%c0_27, %c0_28] : memref<8x32xf32, #tpu.memory_space<vmem>>, vector<8x32xf32>
      %c0_29 = arith.constant 0 : index
      %c0_30 = arith.constant 0 : index
      %41 = vector.load %arg7[%c0_29, %c0_30] : memref<1x32xf32, #tpu.memory_space<vmem>>, vector<1x32xf32>
      %42 = vector.broadcast %41 : vector<1x32xf32> to vector<8x32xf32>
      %43 = arith.addf %40, %42 : vector<8x32xf32>
      %c0_31 = arith.constant 0 : index
      %c0_32 = arith.constant 0 : index
      %c0_33 = arith.constant 0 : index
      %44 = vector.load %arg8[%c0_31, %c0_32, %c0_33] : memref<1x8x32xf32, #tpu.memory_space<vmem>>, vector<1x8x32xf32>
      %45 = vector.shape_cast %44 : vector<1x8x32xf32> to vector<8x32xf32>
      %46 = vector.shape_cast %43 : vector<8x32xf32> to vector<1x8x32xf32>
      tpu.vector_store %arg8[%c0_31, %c0_32, %c0_33], %46 {strides = array<i32>} : memref<1x8x32xf32, #tpu.memory_space<vmem>>, vector<1x8x32xf32>,
    } else {
    }
    return
  }
  func.func @transform_0(%arg0: i32, %arg1: i32) -> (i32, i32, i32) {
    %c0_i32 = arith.constant 0 : i32
    %c0_i32_0 = arith.constant 0 : i32
    %c0_i32_1 = arith.constant 0 : i32
    return %arg0, %c0_i32, %c0_i32_0 : i32, i32, i32
  }
  func.func @transform_1(%arg0: i32, %arg1: i32) -> (i32, i32, i32) {
    %c0_i32 = arith.constant 0 : i32
    %c0_i32_0 = arith.constant 0 : i32
    %c0_i32_1 = arith.constant 0 : i32
    return %arg1, %c0_i32, %c0_i32_0 : i32, i32, i32
  }
  func.func @transform_2(%arg0: i32, %arg1: i32) -> (i32, i32, i32) {
    %c0_i32 = arith.constant 0 : i32
    %c0_i32_0 = arith.constant 0 : i32
    %c0_i32_1 = arith.constant 0 : i32
    return %arg1, %c0_i32, %c0_i32_0 : i32, i32, i32
  }
  func.func @transform_3(%arg0: i32, %arg1: i32) -> (i32, i32, i32) {
    %c0_i32 = arith.constant 0 : i32
    %c0_i32_0 = arith.constant 0 : i32
    %c0_i32_1 = arith.constant 0 : i32
    return %arg1, %c0_i32, %c0_i32_0 : i32, i32, i32
  }
  func.func @transform_4(%arg0: i32, %arg1: i32) -> (i32, i32, i32) {
    %c0_i32 = arith.constant 0 : i32
    %c0_i32_0 = arith.constant 0 : i32
    %c0_i32_1 = arith.constant 0 : i32
    return %arg1, %c0_i32, %c0_i32_0 : i32, i32, i32
  }
  func.func @transform_5(%arg0: i32, %arg1: i32) -> (i32, i32) {
    %c0_i32 = arith.constant 0 : i32
    %c0_i32_0 = arith.constant 0 : i32
    %c0_i32_1 = arith.constant 0 : i32
    return %c0_i32, %c0_i32_0 : i32, i32
  }
  func.func @transform_6(%arg0: i32, %arg1: i32) -> (i32, i32, i32) {
    %c0_i32 = arith.constant 0 : i32
    %c0_i32_0 = arith.constant 0 : i32
    %c0_i32_1 = arith.constant 0 : i32
    return %arg0, %c0_i32, %c0_i32_0 : i32, i32, i32
  }
}

</mosaic_0001>

<bundles_post_ra>
// kernel: tpu_custom_call.1
= control target key start
LH: loop header
LB: loop body
LE: loop exit
PB: predicated region body
PF: predicated region fallthrough
CT: control target
= control target key end

     0   :  { %s1311_s0 = inlined_call_operand.vmem [shape: bf16[2,8,32], index: 0, kind: input, shape index: {}]   ;;  %s1312_s1 = inlined_call_operand.vmem [shape: bf16[4,32,8], index: 1, kind: input, shape index: {}]   ;;  %s1313_s2 = inlined_call_operand.vmem [shape: bf16[4,32,8], index: 2, kind: input, shape index: {}]   ;;  %s1314_s3 = inlined_call_operand.vmem [shape: bf16[4,32,8], index: 3, kind: input, shape index: {}]   ;;  %s1315_s4 = inlined_call_operand.vmem [shape: bf16[4,8,32], index: 4, kind: input, shape index: {}]   ;;  %s1316_s5 = inlined_call_operand.vmem [shape: f32[1,32], index: 5, kind: input, shape index: {}]   ;;  %s1317_s6 = inlined_call_operand.hbm [shape: f32[2,8,32], index: 6, kind: output, shape index: {}]  }
   0x1   :  { %1321 = sst [smem:[#allocation9_spill]] %s1313_s2 }
   0x2   :  { %11 = vsyncpa [#allocation4], 0 }
   0x3   :  { %13 = vsyncpa [#allocation4 + $0x1], 0  ;;  %s1133_s21 = smov 0   ;;  %s1135_s22 = smov 0  }
   0x4   :  { %s1137_s23 = smov 0   ;;  %s1139_s24 = smov 0  }
   0x5   :  { %s1141_s25 = smov 0   ;;  %s1143_s26 = smov 0  }
   0x6   :  { %s1145_s27 = smov 0   ;;  %s1147_s28 = smov 0  }
   0x7 LB: > { %1322 = sst [smem:[#allocation6_spill]] %s1088_s27  ;;  %s821_s29 = sadd.s32 4294967295, %s1092_s28   ;;  %s1092_s28 = sphi %s1147_s28, %s19_s28   ;;  %s1088_s27 = sphi %s1145_s27, %s1331_s27   ;;  %s1084_s26 = sphi %s1143_s26, %s1336_s26   ;;  %s1080_s25 = sphi %s1141_s25, %s1329_s25   ;;  %s1076_s24 = sphi %s1139_s24, %s1335_s24   ;;  %s1072_s23 = sphi %s1137_s23, %s1334_s23   ;;  %s1068_s22 = sphi %s1135_s22, %s1333_s22   ;;  %s1064_s21 = sphi %s1133_s21, %s1332_s21  }
   0x8   : > { %s822_s30 = sadd.s32 4294967294, %s1092_s28   ;;  %s28_s7 = sadd.s32 1, %s1084_s26 }
   0x9   : > { %p29_p0 = scmp.ge.s32.totalorder %s28_s7, 4  ;;  %s31_s8 = sadd.s32 1, %s1088_s27 }
   0xa   : > { %p199_p1 = scmp.ne.s32.totalorder %s1072_s23, %s1068_s22  ;;  %p200_p2 = scmp.eq.s32.totalorder %s821_s29, 7 }
   0xb   : > { %s1338_s7 = smov (%p29_p0, %s28_s7), 0  ;;  %s1340_s8 = smov (!%p29_p0, %s31_s8), %s1088_s27 }
   0xc   : > { %1323 = sst [smem:[#allocation7_spill]] %s1338_s7  ;;  %p1182_p3 = por %p200_p2, %p199_p1 }
   0xd   : > { %p205_p4 = scmp.ne.s32.totalorder %s1068_s22, %s1064_s21  ;;  %p33_p5 = scmp.ge.s32.totalorder %s1340_s8, 2 }
   0xe   : > { %p206_p6 = scmp.eq.s32.totalorder %s822_s30, 7  ;;  %p825_p7 = scmp.ge.s32.totalorder %s1092_s28, 1 }
   0xf   : > { %p265_p8 = scmp.lt.s32.totalorder %s1092_s28, 9  ;;  %s1342_s8 = smov (%p33_p5, %s1340_s8), 0 }
  0x10   : > { %1325 = sst [smem:[#allocation8_spill]] %s1342_s8  ;;  %p1192_p9 = por %p206_p6, %p205_p4 }
  0x11   : > { %p266_p10 = pnand %p825_p7, %p265_p8  ;;  %s186_s11 = ssub.s32 %s1088_s27, %s1342_s8 }
  0x12   : > { %s189_s12 = sadd.s32 1, %s1072_s23  ;;  %p187_p11 = scmp.eq.s32.totalorder %s186_s11, 0  ;;  %v1094_v0 = vmov (!%p266_p10), 0.0   ;;  %vm1095_vm0 = vmmov (!%p266_p10), 0   ;;  %vm354_vm1 = vcmask (!%p266_p10), 261120   ;;  %vm512_vm2 = vcmask (!%p266_p10), 64512  }
  0x13   : > { %269 = sbr.rel (%p266_p10) target bundleno = 1256 (0x4e8), region = 44  ;;  %p317_p12 = scmp.lt.s32.totalorder (!%p266_p10), %s1076_s24, 3  ;;  %880 = vmatprep.subr.bf16.mxu1 (!%p266_p10), %v1094_v0  ;;  %872 = vmatprep.subr.bf16.mxu0 (!%p266_p10), %v1094_v0  ;;  %vm575_vm3 = vcmask (!%p266_p10), 1043456  }
  0x14   : > { %s1200_s13 = scalar_select %p187_p11, %s1072_s23, %s189_s12  }
  0x15   : > { %s1318_s14 = sand.u32 (!%p266_p10), 1, %s1068_s22   ;;  %884 = vmatprep.mubr.msk.bf16.mxu1 (!%p266_p10), %vm1095_vm0, %v1094_v0  ;;  %876 = vmatprep.mubr.msk.bf16.mxu0 (!%p266_p10), %vm1095_vm0, %v1094_v0  ;;  %p313_p13 = scmp.lt.s32.totalorder (!%p266_p10), %s1080_s25, 1 }
  0x16   : > { %s1206_s15 = sshll.u32 (!%p266_p10), %s1318_s14, 3  ;;  %s1327_s2 = sld [smem:[#allocation9_spill]] (!%p266_p10) }
  0x17   : > { %s312_s14 = scalar_lea.vmem (!%p266_p10), [#allocation3], %s1206_s15  ;;  %p847_p0 = scmp.ne.s32.totalorder (!%p266_p10), %s1076_s24, 0 }
  0x1a   : > { %s1209_s16 = scalar_select %p317_p12, %s1076_s24, 3 }
  0x1b   : > { %s314_s12 = scalar_select %p313_p13, %s1080_s25, 1 }
  0x1c   : > { %s854_s17 = sshll.u32 %s1209_s16, 4  ;;  %v1096_v50 = vmov (!%p847_p0), 0.0  }
  0x1d   : > { %s326_s20 = scalar_lea.vmem %s1327_s2, %s854_s17  ;;  %s321_s11 = scalar_lea.vmem %s1312_s1, %s854_s17  ;;  %671 = vst.msk [vmem:[#allocation2] sm:$0xff] (!%p847_p0), %vm354_vm1, %v1096_v50 }
  0x1e   : > { %v988_v1 = vld [vmem:[%s326_s20] sm:$0xff]   ;;  %v989_v2 = vld [vmem:[%s326_s20 + $0x8] sm:$0xff]   ;;  %s1225_s7 = scalar_lea.vmem %s1314_s3, %s854_s17  ;;  %s827_s27 = sshll.u32 %s314_s12, 2 }
  0x1f   : > { %881 = vmatpush3.bf16.msra.mxu1 %v988_v1  ;;  %v990_v3 = vld [vmem:[%s321_s11] sm:$0xff]   ;;  %v991_v4 = vld [vmem:[%s321_s11 + $0x8] sm:$0xff]   ;;  %s316_s2 = scalar_lea.vmem %s1311_s0, %s827_s27 }
  0x20   : > { %882 = vmatprep.subr.bf16.mxu1 %v1094_v0  ;;  %873 = vmatpush3.bf16.msra.mxu0 %v990_v3  ;;  %v337_v5 = vld [vmem:[%s316_s2] sm:$0xf]  ;;  %v993_v18 = vld [vmem:[%s1225_s7 + $0x8] sm:$0xff]   ;;  %s834_s2 = sshll.u32 %s1209_s16, 2 }
  0x21   : > { %874 = vmatprep.subr.bf16.mxu0 %v1094_v0  ;;  %v992_v17 = vld [vmem:[%s1225_s7] sm:$0xff]   ;;  %s335_s8 = scalar_lea.vmem %s1315_s4, %s834_s2 }
  0x22   : > { %v620_v35 = vld [vmem:[%s335_s8] sm:$0xf] }
  0x23   : > { %883 = vmatpush3.bf16.msra.mxu1 %v989_v2  ;;  %v625_v36 = vsel %vm575_vm3, %v620_v35, 0 }
  0x24   : > { %896 = vmatprep.subr.bf16.mxu1 %v1094_v0  ;;  %875 = vmatpush3.bf16.msra.mxu0 %v991_v4 }
  0x25   : > { %888 = vmatprep.subr.bf16.mxu0 %v1094_v0 }
  0x26   : > { %885 = vmatmul.mubr.msk.bf16.vlgmr.msra.gmra.mrb[0].mxu1 %vm354_vm1, %v337_v5 }
  0x27   : > { %898 = vmatprep.mubr.msk.bf16.mxu1 %vm1095_vm0, %v1094_v0  ;;  %877 = vmatmul.mubr.msk.bf16.vlgmr.msra.gmra.mrb[0].mxu0 %vm354_vm1, %v337_v5 }
  0x28   : > { %892 = vmatprep.mubr.msk.bf16.mxu0 %vm1095_vm0, %v1094_v0  ;;  %889 = vmatpush3.bf16.msra.mxu0 %v992_v17 }
  0x29   : > { %890 = vmatprep.subr.bf16.mxu0 %v1094_v0 }
  0x2c   : > { %891 = vmatpush3.bf16.msra.mxu0 %v993_v18 }
  0x2d   : > { %902 = vmatprep.subr.bf16.mxu0 %v1094_v0 }
  0x2f   : > { %893 = vmatmul.mubr.msk.bf16.vlgmr.msra.gmra.mrb[4].mxu0 %vm354_vm1, %v337_v5 }
  0x30   : > { %904 = vmatprep.mubr.msk.bf16.mxu0 %vm1095_vm0, %v1094_v0 }
  0xf9   : > { %v448_v6 = vpop.f32.mrb[0].mxu1 }
  0xfa   : > { %v511_v7 = vpack.c.bf16 %v448_v6, %v448_v6  ;;  %v886_v8 = vpop.f32.mrb[1].mxu1  ;;  %v392_v10 = vpop.f32.mrb[0].mxu0 }
  0xfb   : > { %v451_v9 = vpop.f32.mrb[2].mxu1  ;;  %v878_v13 = vpop.f32.mrb[1].mxu0  ;;  %v510_v16 = vpack.c.bf16 %v392_v10, %v392_v10 }
  0xfc   : > { %v517_v11 = vsel %vm512_vm2, %v511_v7, 0  ;;  %v887_v12 = vpop.f32.mrb[3].mxu1  ;;  %v395_v14 = vpop.f32.mrb[2].mxu0 }
  0xfd   : > { %897 = vmatpush3.bf16.xpose.msra.mxu1 %v517_v11  ;;  %v879_v15 = vpop.f32.mrb[3].mxu0 }
  0xfe   : > { %908 = vmatprep.subr.bf16.mxu1 %v1094_v0 }
 0x102   : > { %v504_v29 = vpop.f32.mrb[4].mxu0 }
 0x103   : > { %v894_v30 = vpop.f32.mrb[5].mxu0  ;;  %v571_v33 = vpack.c.bf16 %v504_v29, %v504_v29 }
 0x104   : > { %899 = vmatmul.mubr.msk.bf16.vlgmr.msra.gmra.mrb[4].mxu1 %vm512_vm2, %v510_v16  ;;  %v507_v31 = vpop.f32.mrb[6].mxu0 }
 0x105   : > { %910 = vmatprep.mubr.msk.bf16.mxu1 %vm1095_vm0, %v1094_v0  ;;  %v895_v32 = vpop.f32.mrb[7].mxu0  ;;  %v577_v34 = vsel %vm575_vm3, %v571_v33, 0  ;;  %909 = vmatpush3.bf16.msra.mxu1 %v625_v36 }
 0x106   : > { %903 = vmatpush3.bf16.msra.mxu0 %v577_v34 }
 0x1d7   : > { %v553_v19 = vpop.f32.mrb[4].mxu1 }
 0x1d8   : > { %v900_v20 = vpop.f32.mrb[5].mxu1  ;;  %v559_v21 = vsel %vm512_vm2, %v553_v19, -inf }
 0x1d9   : > { %560 = vmax.xlane.f32.xlu0 %v559_v21  ;;  %v556_v22 = vpop.f32.mrb[6].mxu1 }
 0x1da   : > { %v901_v23 = vpop.f32.mrb[7].mxu1 }
 0x266   : > { %v561_v24 = vpop.xlane.xlu0 %560 }
 0x267   : > { %v562_v25 = vsub.f32 %v553_v19, %v561_v24 }
 0x269   : > { %v563_v26 = vmul.f32 1.442695, %v562_v25 }
 0x26b   : > { %994 = vpow2.f32 %v563_v26 }
 0x275   : > { %v995_v27 = vpop.eup %994 }
 0x276   : > { %v565_v28 = vsel %vm512_vm2, %v995_v27, 0.0 }
 0x277   : > { %566 = vadd.xlane.f32.xlu0 %v565_v28 }
 0x304   : > { %v567_v37 = vpop.xlane.xlu0 %566 }
 0x305   : > { %996 = vrcp.f32 %v567_v37 }
 0x30f   : > { %v997_v38 = vpop.eup %996 }
 0x310   : > { %v569_v39 = vmul.f32 %v997_v38, %v995_v27 }
 0x312   : > { %v570_v40 = vpack.c.bf16 %v569_v39, %v569_v39 }
 0x314   : > { %905 = vmatmul.mubr.msk.bf16.vlgmr.msra.gmra.mrb[8].mxu0 %vm512_vm2, %v570_v40 }
 0x3e7   : > { %v613_v41 = vpop.f32.mrb[8].mxu0 }
 0x3e8   : > { %v619_v42 = vpack.c.bf16 %v613_v41, %v613_v41  ;;  %v906_v43 = vpop.f32.mrb[9].mxu0 }
 0x3e9   : > { %v616_v44 = vpop.f32.mrb[10].mxu0 }
 0x3ea   : > { %v907_v45 = vpop.f32.mrb[11].mxu0  ;;  %911 = vmatmul.mubr.msk.bf16.vlgmr.msra.gmra.mrb[8].mxu1 %vm512_vm2, %v619_v42 }
 0x4ba   : > { %670 = sbr.rel (%p847_p0) target bundleno = 1217 (0x4c1), region = 48 }
 0x4bd   : > { %v661_v46 = vpop.f32.mrb[8].mxu1 }
 0x4be   : > { %v912_v47 = vpop.f32.mrb[9].mxu1 }
 0x4bf   : > { %v664_v48 = vpop.f32.mrb[10].mxu1 }
 0x4c0   : > { %v913_v49 = vpop.f32.mrb[11].mxu1 }
 0x4c1 PF: > { %v672_v51 = vld [vmem:[#allocation2] sm:$0xff]  ;;  %p848_p1 = scmp.ne.s32.totalorder %s1076_s24, 3 }
 0x4c2   : > { %v673_v52 = vadd.f32 %v672_v51, %v661_v46  ;;  %v849_v54 = vld [vmem:[%s1316_s5] ss:$0 sm:$0xff] (!%p848_p1) }
 0x4c3   : > { %678 = sbr.rel (%p848_p1) target bundleno = 1231 (0x4cf), region = 52 }
 0x4c4   : > { %674 = vst.msk [vmem:[#allocation2] sm:$0xff] %vm354_vm1, %v673_v52 }
 0x4cb   : > { %v679_v53 = vld [vmem:[#allocation2] sm:$0xff] }
 0x4cc   : > { %v687_v55 = vadd.f32 %v849_v54, %v679_v53 }
 0x4ce   : > { %688 = vst.msk [vmem:[%s312_s14] sm:$0xff] %vm354_vm1, %v687_v55 }
 0x4cf PF: > { %s851_s15 = sshll.u32 %s1080_s25, 7  ;;  %s703_s24 = sshll.u32 %s312_s14, 4  ;;  %s704_s24 = int_to_ptr.vmem [resolvable:$true] %s703_s24 }
 0x4d0   : > { %s1262_s30 = scalar_lea.hbm %s1317_s6, %s851_s15  ;;  %s1328_s11 = sand.u32 1, %s1068_s22  }
 0x4d1   : > { %s690_s12 = scalar_lea.sflag [#allocation4], %s1328_s11  ;;  %s998_s18 = scalar_lea.vmem %s704_s24, 128 }
 0x4d2   : > { %p999_p2 = scmp.ne.s32.totalorder %s704_s24, %s998_s18  ;;  %s1097_s19 = smov [#allocation3]  }
 0x4d3   : > { %s1002_s2 = sshll.u32 %s1097_s19, 4  ;;  %s1003_s2 = int_to_ptr.vmem [resolvable:$false] %s1002_s2 }
 0x4d4   : > { %p1000_p4 = pnand %p999_p2, %p1182_p3  ;;  %s1004_s27 = scalar_lea.vmem %s1003_s2, 256 }
 0x4d5   : > { %p1005_p6 = scmp.lt.s32.totalorder %s704_s24, %s1003_s2  ;;  %p1006_p7 = scmp.lt.s32.totalorder %s1004_s27, %s998_s18 }
 0x4d6   : > { %p1001_p5 = pneg %p1000_p4 }
 0x4d7   : > { %p1007_p8 = por %p1006_p7, %p1005_p6 }
 0x4d9   : > { %p1008_p10 = pnand %p1007_p8, %p1001_p5 }
 0x4db   : > { %1011 = shalt.err (!%p1008_p10)
}
 0x4dc   : > { %s1012_s25 = scalar_lea.hbm %s1262_s30, 128  ;;  %s1016_s14 = scalar_lea.hbm %s1317_s6, 256 }
 0x4dd   : > { %p1013_p11 = scmp.ne.s32.totalorder %s1262_s30, %s1012_s25  ;;  %p1017_p0 = scmp.lt.u32.totalorder %s1262_s30, %s1317_s6 }
 0x4de   : > { %p1018_p1 = scmp.lt.u32.totalorder %s1016_s14, %s1012_s25  ;;  %p1020_p4 = scmp.lt.u32.totalorder %s1012_s25, %s1262_s30 }
 0x4df   : > { %p1014_p12 = pnand %p1013_p11, %p1182_p3 }
 0x4e0   : > { %p1019_p2 = por %p1018_p1, %p1017_p0 }
 0x4e1   : > { %p1015_p13 = pneg %p1014_p12 }
 0x4e2   : > { %p1021_p5 = por %p1020_p4, %p1019_p2 }
 0x4e4   : > { %p1022_p6 = pnand %p1021_p5, %p1015_p13 }
 0x4e6   : > { %1025 = shalt.err (!%p1022_p6)
}
 0x4e7   : > { %914 = dma.vmem_to_hbm [thread:$0]  (%p1182_p3), %s704_s24, 128, %s1262_s30, %s690_s12  }
 0x4e8 PF: > { %p920_p7 = scmp.ge.s32.totalorder %s1092_s28, 2  ;;  %s715_s15 = sand.u32 1, %s1064_s21  }
 0x4e9   : > { %s716_s20 = scalar_lea.sflag [#allocation4], %s715_s15 }
 0x4ea   : > { %p917_p8 = pnand %p920_p7, %p1192_p9 }
 0x4ec   : > { %1059 = dma.done.wait (!%p917_p8), %s716_s20, 128  }
 0x4ed   : > { %1061 = vsyncadd (!%p917_p8), %s716_s20, 4294967168  ;;  %s19_s28 = sadd.s32 1, %s1092_s28   ;;  %s1329_s25 = sld [smem:[#allocation6_spill]] }
 0x4ee   : > { %p16_p10 = scmp.ge.s32.totalorder %s19_s28, 10   ;;  %s1330_s9 = sld [smem:[#allocation7_spill]] }
 0x4ef   : > { %s1331_s27 = sld [smem:[#allocation8_spill]]  ;;  %s1332_s21 = smov %s1068_s22 }
 0x4f0   : > { %s1333_s22 = smov %s1072_s23  ;;  %s1334_s23 = smov %s1200_s13 }
 0x4f1   : > { %s1335_s24 = smov %s1084_s26  ;;  %18 = sbr.rel (!%p16_p10) target bundleno = 7 (0x7), region = 99 }
 0x4f4   : > { %s1336_s26 = smov %s1330_s9 }
 0x4f8   :  { %721 = vsyncpa [#allocation4], 1 }
 0x4f9   :  { %723 = vsyncpa [#allocation4 + $0x1], 1 }

</bundles_post_ra>
